<compile_context>
chip_gen: v6e
topology: v6e:2x2x1
jax: 0.10.0
libtpu: 0.0.40
codegen_flags: <defaults>
</compile_context>

<pallas_src>
import jax
import jax.numpy as jnp
from jax import lax
from jax.experimental import pallas as pl
from jax.experimental.pallas import tpu as pltpu

KH = KW = 5            # conv kernel size
H_IN = W_IN = 10       # spatial input implied by view(-1, 36): 10x10 -> 6x6
FC_IN, FC_OUT = 36, 5
MAX_TM = 512           # batch tile cap (re-derived for v7x's 64 MiB VMEM)


def _net_fused_kernel(x_ref, wt_ref, bc_ref, wfc_ref, bfc_ref, o_ref):
    """Fused conv(5x5,1->1 as Toeplitz matmul) + ReLU + Linear(36,5) + ReLU.

    x_ref  : (TM, 100) f32 VMEM  flattened input rows (ih*10 + iw)
    wt_ref : (100, 36) f32 VMEM  Toeplitz conv matrix built from w_conv
    bc_ref : (1,)      f32 SMEM  conv bias (scalar)
    wfc_ref: (5, 36)   f32 VMEM  fc1 weight (PyTorch layout, NOT transposed)
    bfc_ref: (1, 5)    f32 VMEM  fc1 bias
    o_ref  : (TM, 5)   f32 VMEM  output
    """
    # --- conv as one MXU matmul: (TM,100)@(100,36), + bias, ReLU ------------
    h = jnp.dot(x_ref[...], wt_ref[...], preferred_element_type=jnp.float32)
    h = jnp.maximum(h + bc_ref[0], 0.0)            # == relu(conv).view(-1, 36)

    # --- fc1: y = h @ w_fc.T + b (transposed contraction, no wrapper .T) ----
    y = lax.dot_general(h, wfc_ref[...],
                        dimension_numbers=(((1,), (1,)), ((), ())),
                        preferred_element_type=jnp.float32)
    o_ref[...] = jnp.maximum(y + bfc_ref[...], 0.0)


def _build_toeplitz(w_conv, hgt, wid):
    """Scatter the 5x5 conv weight into a (H*W, OH*OW) Toeplitz matrix.

    T[ih*W+iw, oh*OW+ow] = w[ih-oh, iw-ow] when 0<=ih-oh<KH and 0<=iw-ow<KW.
    Cheap XLA ops, traced once under jit; only valid for C_in = C_out = 1.
    """
    oh_n, ow_n = hgt - KH + 1, wid - KW + 1
    w = w_conv.reshape(KH, KW)
    ih = jnp.arange(hgt)[:, None, None, None]
    iw = jnp.arange(wid)[None, :, None, None]
    oh = jnp.arange(oh_n)[None, None, :, None]
    ow = jnp.arange(ow_n)[None, None, None, :]
    kh, kw = ih - oh, iw - ow
    valid = (kh >= 0) & (kh < KH) & (kw >= 0) & (kw < KW)
    vals = w[jnp.clip(kh, 0, KH - 1), jnp.clip(kw, 0, KW - 1)]
    return jnp.where(valid, vals, 0.0).reshape(hgt * wid, oh_n * ow_n)


@jax.jit
def net_forward(x, params):
    """Reproduces Net.forward for NCHW float32 input (N, 1, 10, 10)."""
    w_conv, b_conv, w_fc, b_fc = params
    n, _, hgt, wid = x.shape
    hw = hgt * wid                                   # 100
    oh_ow = (hgt - KH + 1) * (wid - KW + 1)          # 36

    w_toep = _build_toeplitz(w_conv, hgt, wid)       # (100, 36)
    x_flat = x.reshape(n, hw)                        # (N, 100)

    tm = n if n < MAX_TM else MAX_TM                 # tile = full batch if small
    grid = (pl.cdiv(n, tm),)

    return pl.pallas_call(
        _net_fused_kernel,
        out_shape=jax.ShapeDtypeStruct((n, FC_OUT), jnp.float32),
        grid=grid,
        in_specs=[
            pl.BlockSpec((tm, hw), lambda i: (i, 0)),                 # x rows
            pl.BlockSpec((hw, oh_ow), lambda i: (0, 0)),              # Toeplitz
            pl.BlockSpec(memory_space=pltpu.MemorySpace.SMEM),        # b_conv
            pl.BlockSpec((FC_OUT, FC_IN), lambda i: (0, 0)),          # w_fc
            pl.BlockSpec((1, FC_OUT), lambda i: (0, 0)),              # b_fc
        ],
        out_specs=pl.BlockSpec((tm, FC_OUT), lambda i: (i, 0)),
        compiler_params=pltpu.CompilerParams(
            dimension_semantics=("parallel",)),
    )(x_flat, w_toep, b_conv.reshape(1), w_fc, b_fc.reshape(1, FC_OUT))


def init_params(key):
    """Deterministic parameter init with the same shapes as Net.__init__."""
    k1, k2, k3, k4 = jax.random.split(key, 4)
    w_conv = jax.random.normal(k1, (1, 1, KH, KW), jnp.float32) * 0.2
    b_conv = jax.random.normal(k2, (1,), jnp.float32) * 0.1
    w_fc = jax.random.normal(k3, (FC_OUT, FC_IN), jnp.float32) * 0.1
    b_fc = jax.random.normal(k4, (FC_OUT,), jnp.float32) * 0.1
    return w_conv, b_conv, w_fc, b_fc


if __name__ == "__main__":
    key = jax.random.PRNGKey(0)
    kx, kp = jax.random.split(key)
    # Input must be (N, 1, 10, 10) so conv output is (N, 1, 6, 6) -> view(-1, 36)
    x = jax.random.normal(kx, (2, 1, H_IN, W_IN), jnp.float32)
    params = init_params(kp)

    out = jax.block_until_ready(net_forward(x, params))

    # Pure-JAX reference (matches the PyTorch forward exactly).
    w_conv, b_conv, w_fc, b_fc = params
    ref_conv = lax.conv_general_dilated(
        x, w_conv, window_strides=(1, 1), padding="VALID",
        dimension_numbers=("NCHW", "OIHW", "NCHW")) + b_conv.reshape(1, 1, 1, 1)
    ref_h = jnp.maximum(ref_conv, 0.0).reshape(-1, FC_IN)
    ref = jnp.maximum(ref_h @ w_fc.T + b_fc, 0.0)

    assert out.shape == (2, FC_OUT)
    assert jnp.allclose(out, ref, atol=1e-5, rtol=1e-5)

    print("KERNEL_OK")
</pallas_src>

<mosaic_0001>
module attributes {stable_mosaic.version = 11 : i64} {
  func.func @_net_fused_kernel(%arg0: i32, %arg1: memref<2x100xf32, #tpu.memory_space<vmem>>, %arg2: memref<100x36xf32, #tpu.memory_space<vmem>>, %arg3: memref<1xf32, #tpu.memory_space<smem>>, %arg4: memref<5x36xf32, #tpu.memory_space<vmem>>, %arg5: memref<1x5xf32, #tpu.memory_space<vmem>>, %arg6: memref<2x5xf32, #tpu.memory_space<vmem>>) attributes {dimension_semantics = [#tpu.dimension_semantics<parallel>], iteration_bounds = array<i64: 1>, scalar_prefetch = 0 : i64, scratch_operands = 0 : i64, tpu.core_type = #tpu.core_type<tc>, window_params = [{transform_indices = @transform_0, window_bounds = array<i64: 2, 100>}, {pipeline_mode = #tpu.pipeline_mode<synchronous>, transform_indices = @transform_1, window_bounds = array<i64: 100, 36>}, {transform_indices = @transform_2, window_bounds = array<i64: 1>}, {pipeline_mode = #tpu.pipeline_mode<synchronous>, transform_indices = @transform_3, window_bounds = array<i64: 5, 36>}, {pipeline_mode = #tpu.pipeline_mode<synchronous>, transform_indices = @transform_4, window_bounds = array<i64: 1, 5>}, {transform_indices = @transform_5, window_bounds = array<i64: 2, 5>}]} {
    %c0 = arith.constant 0 : index
    %c0_0 = arith.constant 0 : index
    %0 = vector.load %arg1[%c0, %c0_0] : memref<2x100xf32, #tpu.memory_space<vmem>>, vector<2x100xf32>
    %c0_1 = arith.constant 0 : index
    %c0_2 = arith.constant 0 : index
    %1 = vector.load %arg2[%c0_1, %c0_2] : memref<100x36xf32, #tpu.memory_space<vmem>>, vector<100x36xf32>
    %cst = arith.constant dense<0.000000e+00> : vector<2x36xf32>
    %2 = tpu.matmul %0, %1, %cst {dimension_numbers = #tpu.dot_dimension_numbers<[1], [0], [0], [1], [0, 0, 1, 1], [], []>} : vector<2x100xf32>, vector<100x36xf32>, vector<2x36xf32> -> vector<2x36xf32>
    %c0_3 = arith.constant 0 : index
    %3 = memref.load %arg3[%c0_3] : memref<1xf32, #tpu.memory_space<smem>>
    %4 = vector.broadcast %3 : f32 to vector<2x36xf32>
    %5 = arith.addf %2, %4 : vector<2x36xf32>
    %cst_4 = arith.constant 0.000000e+00 : f32
    %6 = vector.broadcast %cst_4 : f32 to vector<2x36xf32>
    %7 = arith.maximumf %5, %6 : vector<2x36xf32>
    %c0_5 = arith.constant 0 : index
    %c0_6 = arith.constant 0 : index
    %8 = vector.load %arg4[%c0_5, %c0_6] : memref<5x36xf32, #tpu.memory_space<vmem>>, vector<5x36xf32>
    %cst_7 = arith.constant dense<0.000000e+00> : vector<2x5xf32>
    %9 = tpu.matmul %7, %8, %cst_7 {dimension_numbers = #tpu.dot_dimension_numbers<[1], [1], [0], [0], [0, 0, 1, 0], [], []>} : vector<2x36xf32>, vector<5x36xf32>, vector<2x5xf32> -> vector<2x5xf32>
    %c0_8 = arith.constant 0 : index
    %c0_9 = arith.constant 0 : index
    %10 = vector.load %arg5[%c0_8, %c0_9] : memref<1x5xf32, #tpu.memory_space<vmem>>, vector<1x5xf32>
    %11 = vector.broadcast %10 : vector<1x5xf32> to vector<2x5xf32>
    %12 = arith.addf %9, %11 : vector<2x5xf32>
    %cst_10 = arith.constant 0.000000e+00 : f32
    %13 = vector.broadcast %cst_10 : f32 to vector<2x5xf32>
    %14 = arith.maximumf %12, %13 : vector<2x5xf32>
    %c0_11 = arith.constant 0 : index
    %c0_12 = arith.constant 0 : index
    %15 = vector.load %arg6[%c0_11, %c0_12] : memref<2x5xf32, #tpu.memory_space<vmem>>, vector<2x5xf32>
    tpu.vector_store %arg6[%c0_11, %c0_12], %14 {strides = array<i32>} : memref<2x5xf32, #tpu.memory_space<vmem>>, vector<2x5xf32>,
    return
  }
  func.func @transform_0(%arg0: i32) -> (i32, i32) {
    %c0_i32 = arith.constant 0 : i32
    %c0_i32_0 = arith.constant 0 : i32
    return %arg0, %c0_i32 : i32, i32
  }
  func.func @transform_1(%arg0: i32) -> (i32, i32) {
    %c0_i32 = arith.constant 0 : i32
    %c0_i32_0 = arith.constant 0 : i32
    %c0_i32_1 = arith.constant 0 : i32
    return %c0_i32, %c0_i32_0 : i32, i32
  }
  func.func @transform_2(%arg0: i32) -> i32 {
    %c0_i32 = arith.constant 0 : i32
    %c0_i32_0 = arith.constant 0 : i32
    return %c0_i32 : i32
  }
  func.func @transform_3(%arg0: i32) -> (i32, i32) {
    %c0_i32 = arith.constant 0 : i32
    %c0_i32_0 = arith.constant 0 : i32
    %c0_i32_1 = arith.constant 0 : i32
    return %c0_i32, %c0_i32_0 : i32, i32
  }
  func.func @transform_4(%arg0: i32) -> (i32, i32) {
    %c0_i32 = arith.constant 0 : i32
    %c0_i32_0 = arith.constant 0 : i32
    %c0_i32_1 = arith.constant 0 : i32
    return %c0_i32, %c0_i32_0 : i32, i32
  }
  func.func @transform_5(%arg0: i32) -> (i32, i32) {
    %c0_i32 = arith.constant 0 : i32
    %c0_i32_0 = arith.constant 0 : i32
    return %arg0, %c0_i32 : i32, i32
  }
}

</mosaic_0001>

<bundles_post_ra>
// kernel: net_forward.1
= control target key start
LH: loop header
LB: loop body
LE: loop exit
PB: predicated region body
PF: predicated region fallthrough
CT: control target
= control target key end

     0   :  { %vm42_vm0 = vcmask 1043456   ;;  %v299_v1 = vmov 0.0   ;;  %vm300_vm1 = vmmov 0   ;;  %s386_s0 = inlined_call_operand.vmem [shape: f32[2,100], index: 0, kind: input, shape index: {}]   ;;  %s387_s1 = inlined_call_operand.vmem [shape: f32[100,36], index: 1, kind: input, shape index: {}]   ;;  %s388_s2 = inlined_call_operand.<no memory space> [shape: f32[1], index: 2, kind: input, shape index: {}]   ;;  %s389_s3 = inlined_call_operand.vmem [shape: f32[5,36], index: 3, kind: input, shape index: {}]   ;;  %s390_s4 = inlined_call_operand.vmem [shape: f32[1,5], index: 4, kind: input, shape index: {}]   ;;  %s391_s5 = inlined_call_operand.hbm [shape: f32[2,5], index: 5, kind: output, shape index: {}]  }
   0x1   :  { %v35_v0 = vld [vmem:[%s387_s1 + $0x60] sm:$0xf]  ;;  %240 = vmatprep.subr.mxu0 %v299_v1  ;;  %v34_v2 = vld [vmem:[%s387_s1 + $0x58] sm:$0xff]  ;;  %269 = vmatprep.subr.mxu1 %v299_v1  ;;  %v33_v3 = vld [vmem:[%s387_s1 + $0x50] sm:$0xff] }
   0x2   :  { %241 = vmatpush3.msk.msra.mxu0 %vm42_vm0, %v35_v0  ;;  %266 = vmatprep.mubr.msk.f32.mxu0 %vm300_vm1, %v299_v1 }
   0x3   :  { %242 = vmatprep.subr.mxu0 %v299_v1  ;;  %271 = vmatprep.mubr.msk.f32.mxu1 %vm300_vm1, %v299_v1 }
   0x4   :  { %243 = vmatpush3.msra.mxu0 %v34_v2 }
   0x5   :  { %11 = vsyncpa [#allocation4], 0  ;;  %244 = vmatprep.subr.mxu0 %v299_v1  ;;  %v32_v4 = vld [vmem:[%s387_s1 + $0x48] sm:$0xff]  ;;  %v31_v5 = vld [vmem:[%s387_s1 + $0x40] sm:$0xff]  ;;  %vm38_vm2 = vcmask 818176   ;;  %vm125_vm3 = vcmask 293888   ;;  %v37_v16 = vstv %s388_s2 }
   0x6   :  { %245 = vmatpush3.msra.mxu0 %v33_v3  ;;  %v30_v6 = vld [vmem:[%s387_s1 + $0x38] sm:$0xff]  ;;  %v29_v7 = vld [vmem:[%s387_s1 + $0x30] sm:$0xff]  ;;  %v28_v8 = vld [vmem:[%s387_s1 + $0x28] sm:$0xff]  ;;  %s301_s25 = smov [#allocation3]   ;;  %vm203_vm4 = vcmask 33792  }
   0x7   :  { %246 = vmatprep.subr.mxu0 %v299_v1  ;;  %v27_v9 = vld [vmem:[%s387_s1 + $0x20] sm:$0xff]  ;;  %v26_v10 = vld [vmem:[%s387_s1 + $0x18] sm:$0xff]  ;;  %v25_v11 = vld [vmem:[%s387_s1 + $0x10] sm:$0xff]  ;;  %s211_s26 = sshll.u32 %s301_s25, 4  ;;  %s212_s26 = int_to_ptr.vmem [resolvable:$true] %s211_s26 }
   0x8   :  { %247 = vmatpush3.msra.mxu0 %v32_v4  ;;  %v24_v12 = vld [vmem:[%s387_s1 + $0x8] sm:$0xff]  ;;  %v23_v13 = vld [vmem:[%s387_s1] sm:$0xff]  ;;  %p282_p1 = scmp.lt.s32.totalorder %s212_s26, %s212_s26 }
   0x9   :  { %248 = vmatprep.subr.mxu0 %v299_v1  ;;  %v22_v14 = vld [vmem:[%s386_s0] sm:$0x3] }
   0xa   :  { %249 = vmatpush3.msra.mxu0 %v31_v5  ;;  %v117_v15 = vld [vmem:[%s389_s3] sm:$0x1f]  ;;  %s277_s3 = scalar_lea.vmem %s212_s26, 32 }
   0xb   :  { %250 = vmatprep.subr.mxu0 %v299_v1  ;;  %270 = vmatpush3.xpose.msk.msra.mxu1 %vm125_vm3, %v117_v15  ;;  %v221_v21 = vld [vmem:[%s390_s4] ss:$0 sm:$0xff]  ;;  %p278_p0 = scmp.ne.s32.totalorder %s212_s26, %s277_s3  ;;  %p283_p2 = scmp.lt.s32.totalorder %s277_s3, %s277_s3 }
   0xc   :  { %251 = vmatpush3.msra.mxu0 %v30_v6 }
   0xd   :  { %252 = vmatprep.subr.mxu0 %v299_v1  ;;  %p284_p3 = por %p283_p2, %p282_p1 }
   0xe   :  { %253 = vmatpush3.msra.mxu0 %v29_v7 }
   0xf   :  { %254 = vmatprep.subr.mxu0 %v299_v1  ;;  %p285_p4 = pnand %p284_p3, %p278_p0 }
  0x10   :  { %255 = vmatpush3.msra.mxu0 %v28_v8 }
  0x11   :  { %256 = vmatprep.subr.mxu0 %v299_v1 }
  0x12   :  { %257 = vmatpush3.msra.mxu0 %v27_v9 }
  0x13   :  { %258 = vmatprep.subr.mxu0 %v299_v1 }
  0x14   :  { %259 = vmatpush3.msra.mxu0 %v26_v10 }
  0x15   :  { %260 = vmatprep.subr.mxu0 %v299_v1 }
  0x16   :  { %261 = vmatpush3.msra.mxu0 %v25_v11 }
  0x17   :  { %262 = vmatprep.subr.mxu0 %v299_v1 }
  0x18   :  { %263 = vmatpush3.msra.mxu0 %v24_v12 }
  0x19   :  { %264 = vmatprep.subr.mxu0 %v299_v1 }
  0x1a   :  { %265 = vmatpush3.msra.mxu0 %v23_v13 }
  0x1b   :  { %267 = vmatmul.mubr.msk.f32.vlgmr.msra.gmra.mxu0 %vm38_vm2, %v22_v14 }
  0xdb   :  { %v112_v17 = vpop.f32.mrf.mxu0 }
  0xdc   :  { %v113_v18 = vadd.f32 %v112_v17, %v37_v16 }
  0xdd   :  { %v268_v19 = vpop.f32.mrf.mxu0 }
  0xde   :  { %v116_v20 = vmax.f32 %v113_v18, 0.0 }
  0xe0   :  { %272 = vmatmul.mubr.msk.f32.vlgmr.msra.gmra.mxu1 %vm125_vm3, %v116_v20 }
 0x1a0   :  { %v198_v22 = vpop.f32.mrf.mxu1 }
 0x1a1   :  { %v199_v23 = vadd.f32 %v221_v21, %v198_v22 }
 0x1a2   :  { %v273_v24 = vpop.f32.mrf.mxu1 }
 0x1a3   :  { %v202_v25 = vmax.f32 %v199_v23, 0.0 }
 0x1a5   :  { %204 = vst.msk [vmem:[#allocation3] sm:$0x3] %vm203_vm4, %v202_v25 }
 0x1a6   :  { %288 = shalt.err (!%p285_p4)
}
 0x1a7   :  { %214 = dma.vmem_to_hbm [thread:$0]  %s212_s26, 32, %s391_s5, [#allocation4]  }
 0x1a8   :  { %297 = dma.done.wait [#allocation4], 32  }
 0x1a9   :  { %298 = vsyncadd [#allocation4], 4294967264 }
 0x1aa   :  { %218 = vsyncpa [#allocation4], 1 }

</bundles_post_ra>
